<compile_context>
chip_gen: v7x
topology: tpu7x:2x2x1
jax: 0.10.0
libtpu: 0.0.40
codegen_flags: <defaults>
</compile_context>

<pallas_src>
import functools

import jax
import jax.numpy as jnp
from jax.experimental import pallas as pl
from jax.experimental.pallas import tpu as pltpu


def _preprocess_kernel(x_ref, w_ref, b_ref, o_ref, xcol_ref, *, kernel_size, pad):
    """Fused pad -> im2col -> single matmul -> bias -> ReLU for Bb batch rows.

    x_ref:    (Bb, C_in, L)        unpadded input rows (one DMA per step)
    w_ref:    (C_out, K*C_in)      im2col-folded conv weight (VMEM-resident)
    b_ref:    (C_out, 1)           bias (VMEM-resident)
    o_ref:    (Bb, C_out, L_out)   output rows
    xcol_ref: (Bb, K*C_in, L_out)  im2col scratch (matmul dtype)
    """
    bb, c_in, L = x_ref.shape
    _, c_out, l_out = o_ref.shape
    x = x_ref[...]

    # Fused ConstantPad1d: for each tap, write the shifted window into the
    # im2col scratch; out-of-range columns get explicit zeros. Every column of
    # the scratch is rewritten each step, so no cross-step / cross-core state.
    for k in range(kernel_size):
        s = k - pad                              # window start, unpadded coords
        lo, hi = max(s, 0), min(s + l_out, L)
        rows = slice(k * c_in, (k + 1) * c_in)
        if hi > lo:
            lw = lo - s                          # left zero-pad width
            if lw > 0:
                xcol_ref[:, rows, 0:lw] = jnp.zeros((bb, c_in, lw), xcol_ref.dtype)
            xcol_ref[:, rows, lw:lw + (hi - lo)] = (
                x[:, :, lo:hi].astype(xcol_ref.dtype))
            rw = l_out - (lw + (hi - lo))        # right zero-pad width
            if rw > 0:
                xcol_ref[:, rows, l_out - rw:l_out] = jnp.zeros(
                    (bb, c_in, rw), xcol_ref.dtype)
        else:                                     # window fully in padding (tiny L)
            xcol_ref[:, rows, :] = jnp.zeros((bb, c_in, l_out), xcol_ref.dtype)

    w = w_ref[...]
    b = b_ref[...]                                # (C_out, 1) broadcasts over lanes
    # One MXU matmul per row (contraction = K*C_in instead of C_in), f32
    # accumulation; bias + ReLU fused on the result (no separate acc loop, so
    # the "init acc with bias" concern is subsumed).
    for bi in range(bb):
        y = jnp.dot(w, xcol_ref[bi], preferred_element_type=jnp.float32)
        o_ref[bi] = jnp.maximum(y + b, 0.0).astype(o_ref.dtype)


def _pick_batch_block(batch, row_bytes, target_bytes=256 * 1024):
    """Largest divisor of `batch` giving ~target_bytes input blocks while
    keeping >= 2 grid steps (so v7x's two TensorCores both get work)."""
    want = max(1, target_bytes // max(row_bytes, 1))
    cap = max(1, min(want, batch // 2 if batch >= 2 else 1))
    bb = 1
    for d in range(1, cap + 1):
        if batch % d == 0:
            bb = d
    return bb


def preprocess(x, weight, bias, *, matmul_dtype=jnp.float32):
    """Forward of Preprocess: ConstantPad1d((K-1)//2, 0) -> Conv1d(C,C,K) -> ReLU.

    x:      [B, C_in, L]      (cast to f32, mirroring `.float()` in the module)
    weight: [C_out, C_in, K]  (PyTorch Conv1d weight layout)
    bias:   [C_out]
    matmul_dtype: jnp.float32 (exact) or jnp.bfloat16 (v6e/v7x MXU option,
                  accumulation stays f32).
    returns [B, C_out, L_out] with L_out = L + 2*((K-1)//2) - K + 1
    """
    x = x.astype(jnp.float32)
    B, C_in, L = x.shape
    C_out, C_in_w, K = weight.shape
    assert C_in_w == C_in
    pad = (K - 1) // 2
    L_out = L + 2 * pad - K + 1
    assert L_out >= 1

    # im2col-folded weight: W_cat[o, k*C_in + c] = weight[o, c, k]
    w_cat = (jnp.transpose(weight, (0, 2, 1))
             .reshape(C_out, K * C_in).astype(matmul_dtype))
    b2 = bias.astype(jnp.float32).reshape(C_out, 1)

    bb = _pick_batch_block(B, C_in * L * 4)
    grid = (B // bb,)

    kernel = functools.partial(_preprocess_kernel, kernel_size=K, pad=pad)

    return pl.pallas_call(
        kernel,
        out_shape=jax.ShapeDtypeStruct((B, C_out, L_out), jnp.float32),
        grid=grid,
        in_specs=[
            # bb unpadded batch rows per grid step (double-buffered by Pallas)
            pl.BlockSpec((bb, C_in, L), lambda i: (i, 0, 0)),
            # weights & bias: constant index_map -> stay VMEM-resident
            pl.BlockSpec((C_out, K * C_in), lambda i: (0, 0)),
            pl.BlockSpec((C_out, 1), lambda i: (0, 0)),
        ],
        out_specs=pl.BlockSpec((bb, C_out, L_out), lambda i: (i, 0, 0)),
        scratch_shapes=[pltpu.VMEM((bb, K * C_in, L_out), matmul_dtype)],
        compiler_params=pltpu.CompilerParams(
            # batch blocks are independent -> shard across v7x's two TensorCores
            dimension_semantics=("parallel",),
        ),
    )(x, w_cat, b2)


def reference(x, weight, bias):
    """Pure-JAX reference (lax conv) for numerical validation."""
    K = weight.shape[-1]
    pad = (K - 1) // 2
    out = jax.lax.conv_general_dilated(
        x.astype(jnp.float32), weight.astype(jnp.float32),
        window_strides=(1,), padding=[(pad, pad)],
        dimension_numbers=("NCH", "OIH", "NCH"))
    out = out + bias.reshape(1, -1, 1)
    return jnp.maximum(out, 0.0)


if __name__ == "__main__":
    # Small but lane-dense: L is a multiple of 128 so output stores are unmasked.
    B, C, L, K = 2, 8, 128, 7

    key = jax.random.PRNGKey(0)
    kx, kw, kb = jax.random.split(key, 3)
    x = jax.random.normal(kx, (B, C, L), jnp.float32)
    bound = 1.0 / jnp.sqrt(jnp.float32(C * K))          # nn.Conv1d default init range
    weight = jax.random.uniform(kw, (C, C, K), jnp.float32, -bound, bound)
    bias = jax.random.uniform(kb, (C,), jnp.float32, -bound, bound)

    out = jax.block_until_ready(preprocess(x, weight, bias))
    ref = jax.block_until_ready(reference(x, weight, bias))

    assert out.shape == ref.shape, (out.shape, ref.shape)
    max_err = float(jnp.max(jnp.abs(out - ref)))
    assert max_err < 1e-4, max_err

    print("KERNEL_OK")
</pallas_src>

<mosaic_0001>
module attributes {stable_mosaic.version = 11 : i64} {
  func.func @_preprocess_kernel(%arg0: i32, %arg1: memref<1x8x128xf32, #tpu.memory_space<vmem>>, %arg2: memref<8x56xf32, #tpu.memory_space<vmem>>, %arg3: memref<8x1xf32, #tpu.memory_space<vmem>>, %arg4: memref<1x8x128xf32, #tpu.memory_space<vmem>>, %arg5: memref<1x56x128xf32, #tpu.memory_space<vmem>>) attributes {dimension_semantics = [#tpu.dimension_semantics<parallel>], iteration_bounds = array<i64: 2>, scalar_prefetch = 0 : i64, scratch_operands = 1 : i64, tpu.core_type = #tpu.core_type<tc>, window_params = [{transform_indices = @transform_0, window_bounds = array<i64: 1, 8, 128>}, {pipeline_mode = #tpu.pipeline_mode<synchronous>, transform_indices = @transform_1, window_bounds = array<i64: 8, 56>}, {pipeline_mode = #tpu.pipeline_mode<synchronous>, transform_indices = @transform_2, window_bounds = array<i64: 8, 1>}, {transform_indices = @transform_3, window_bounds = array<i64: 1, 8, 128>}]} {
    %c0 = arith.constant 0 : index
    %c0_0 = arith.constant 0 : index
    %c0_1 = arith.constant 0 : index
    %0 = vector.load %arg1[%c0, %c0_0, %c0_1] : memref<1x8x128xf32, #tpu.memory_space<vmem>>, vector<1x8x128xf32>
    %cst = arith.constant 0.000000e+00 : f32
    %1 = vector.broadcast %cst : f32 to vector<1x8x3xf32>
    %c0_2 = arith.constant 0 : index
    %c0_3 = arith.constant 0 : index
    %c0_4 = arith.constant 0 : index
    %2 = vector.load %arg5[%c0_2, %c0_3, %c0_4] : memref<1x56x128xf32, #tpu.memory_space<vmem>>, vector<1x8x3xf32>
    tpu.vector_store %arg5[%c0_2, %c0_3, %c0_4], %1 {strides = array<i32>} : memref<1x56x128xf32, #tpu.memory_space<vmem>>, vector<1x8x3xf32>,
    %3 = vector.extract_strided_slice %0 {offsets = [0, 0, 0], sizes = [1, 8, 125], strides = [1, 1, 1]} : vector<1x8x128xf32> to vector<1x8x125xf32>
    %c0_5 = arith.constant 0 : index
    %c0_6 = arith.constant 0 : index
    %c3 = arith.constant 3 : index
    %4 = vector.load %arg5[%c0_5, %c0_6, %c3] : memref<1x56x128xf32, #tpu.memory_space<vmem>>, vector<1x8x125xf32>
    tpu.vector_store %arg5[%c0_5, %c0_6, %c3], %3 {strides = array<i32>} : memref<1x56x128xf32, #tpu.memory_space<vmem>>, vector<1x8x125xf32>,
    %cst_7 = arith.constant 0.000000e+00 : f32
    %5 = vector.broadcast %cst_7 : f32 to vector<1x8x2xf32>
    %c0_8 = arith.constant 0 : index
    %c8 = arith.constant 8 : index
    %c0_9 = arith.constant 0 : index
    %6 = vector.load %arg5[%c0_8, %c8, %c0_9] : memref<1x56x128xf32, #tpu.memory_space<vmem>>, vector<1x8x2xf32>
    tpu.vector_store %arg5[%c0_8, %c8, %c0_9], %5 {strides = array<i32>} : memref<1x56x128xf32, #tpu.memory_space<vmem>>, vector<1x8x2xf32>,
    %7 = vector.extract_strided_slice %0 {offsets = [0, 0, 0], sizes = [1, 8, 126], strides = [1, 1, 1]} : vector<1x8x128xf32> to vector<1x8x126xf32>
    %c0_10 = arith.constant 0 : index
    %c8_11 = arith.constant 8 : index
    %c2 = arith.constant 2 : index
    %8 = vector.load %arg5[%c0_10, %c8_11, %c2] : memref<1x56x128xf32, #tpu.memory_space<vmem>>, vector<1x8x126xf32>
    tpu.vector_store %arg5[%c0_10, %c8_11, %c2], %7 {strides = array<i32>} : memref<1x56x128xf32, #tpu.memory_space<vmem>>, vector<1x8x126xf32>,
    %cst_12 = arith.constant 0.000000e+00 : f32
    %9 = vector.broadcast %cst_12 : f32 to vector<1x8x1xf32>
    %c0_13 = arith.constant 0 : index
    %c16 = arith.constant 16 : index
    %c0_14 = arith.constant 0 : index
    %10 = vector.load %arg5[%c0_13, %c16, %c0_14] : memref<1x56x128xf32, #tpu.memory_space<vmem>>, vector<1x8x1xf32>
    tpu.vector_store %arg5[%c0_13, %c16, %c0_14], %9 {strides = array<i32>} : memref<1x56x128xf32, #tpu.memory_space<vmem>>, vector<1x8x1xf32>,
    %11 = vector.extract_strided_slice %0 {offsets = [0, 0, 0], sizes = [1, 8, 127], strides = [1, 1, 1]} : vector<1x8x128xf32> to vector<1x8x127xf32>
    %c0_15 = arith.constant 0 : index
    %c16_16 = arith.constant 16 : index
    %c1 = arith.constant 1 : index
    %12 = vector.load %arg5[%c0_15, %c16_16, %c1] : memref<1x56x128xf32, #tpu.memory_space<vmem>>, vector<1x8x127xf32>
    tpu.vector_store %arg5[%c0_15, %c16_16, %c1], %11 {strides = array<i32>} : memref<1x56x128xf32, #tpu.memory_space<vmem>>, vector<1x8x127xf32>,
    %c0_17 = arith.constant 0 : index
    %c24 = arith.constant 24 : index
    %c0_18 = arith.constant 0 : index
    %13 = vector.load %arg5[%c0_17, %c24, %c0_18] : memref<1x56x128xf32, #tpu.memory_space<vmem>>, vector<1x8x128xf32>
    tpu.vector_store %arg5[%c0_17, %c24, %c0_18], %0 {strides = array<i32>} : memref<1x56x128xf32, #tpu.memory_space<vmem>>, vector<1x8x128xf32>,
    %14 = vector.extract_strided_slice %0 {offsets = [0, 0, 1], sizes = [1, 8, 127], strides = [1, 1, 1]} : vector<1x8x128xf32> to vector<1x8x127xf32>
    %c0_19 = arith.constant 0 : index
    %c32 = arith.constant 32 : index
    %c0_20 = arith.constant 0 : index
    %15 = vector.load %arg5[%c0_19, %c32, %c0_20] : memref<1x56x128xf32, #tpu.memory_space<vmem>>, vector<1x8x127xf32>
    tpu.vector_store %arg5[%c0_19, %c32, %c0_20], %14 {strides = array<i32>} : memref<1x56x128xf32, #tpu.memory_space<vmem>>, vector<1x8x127xf32>,
    %cst_21 = arith.constant 0.000000e+00 : f32
    %16 = vector.broadcast %cst_21 : f32 to vector<1x8x1xf32>
    %c0_22 = arith.constant 0 : index
    %c32_23 = arith.constant 32 : index
    %c127 = arith.constant 127 : index
    %17 = vector.load %arg5[%c0_22, %c32_23, %c127] : memref<1x56x128xf32, #tpu.memory_space<vmem>>, vector<1x8x1xf32>
    tpu.vector_store %arg5[%c0_22, %c32_23, %c127], %16 {strides = array<i32>} : memref<1x56x128xf32, #tpu.memory_space<vmem>>, vector<1x8x1xf32>,
    %18 = vector.extract_strided_slice %0 {offsets = [0, 0, 2], sizes = [1, 8, 126], strides = [1, 1, 1]} : vector<1x8x128xf32> to vector<1x8x126xf32>
    %c0_24 = arith.constant 0 : index
    %c40 = arith.constant 40 : index
    %c0_25 = arith.constant 0 : index
    %19 = vector.load %arg5[%c0_24, %c40, %c0_25] : memref<1x56x128xf32, #tpu.memory_space<vmem>>, vector<1x8x126xf32>
    tpu.vector_store %arg5[%c0_24, %c40, %c0_25], %18 {strides = array<i32>} : memref<1x56x128xf32, #tpu.memory_space<vmem>>, vector<1x8x126xf32>,
    %cst_26 = arith.constant 0.000000e+00 : f32
    %20 = vector.broadcast %cst_26 : f32 to vector<1x8x2xf32>
    %c0_27 = arith.constant 0 : index
    %c40_28 = arith.constant 40 : index
    %c126 = arith.constant 126 : index
    %21 = vector.load %arg5[%c0_27, %c40_28, %c126] : memref<1x56x128xf32, #tpu.memory_space<vmem>>, vector<1x8x2xf32>
    tpu.vector_store %arg5[%c0_27, %c40_28, %c126], %20 {strides = array<i32>} : memref<1x56x128xf32, #tpu.memory_space<vmem>>, vector<1x8x2xf32>,
    %22 = vector.extract_strided_slice %0 {offsets = [0, 0, 3], sizes = [1, 8, 125], strides = [1, 1, 1]} : vector<1x8x128xf32> to vector<1x8x125xf32>
    %c0_29 = arith.constant 0 : index
    %c48 = arith.constant 48 : index
    %c0_30 = arith.constant 0 : index
    %23 = vector.load %arg5[%c0_29, %c48, %c0_30] : memref<1x56x128xf32, #tpu.memory_space<vmem>>, vector<1x8x125xf32>
    tpu.vector_store %arg5[%c0_29, %c48, %c0_30], %22 {strides = array<i32>} : memref<1x56x128xf32, #tpu.memory_space<vmem>>, vector<1x8x125xf32>,
    %cst_31 = arith.constant 0.000000e+00 : f32
    %24 = vector.broadcast %cst_31 : f32 to vector<1x8x3xf32>
    %c0_32 = arith.constant 0 : index
    %c48_33 = arith.constant 48 : index
    %c125 = arith.constant 125 : index
    %25 = vector.load %arg5[%c0_32, %c48_33, %c125] : memref<1x56x128xf32, #tpu.memory_space<vmem>>, vector<1x8x3xf32>
    tpu.vector_store %arg5[%c0_32, %c48_33, %c125], %24 {strides = array<i32>} : memref<1x56x128xf32, #tpu.memory_space<vmem>>, vector<1x8x3xf32>,
    %c0_34 = arith.constant 0 : index
    %c0_35 = arith.constant 0 : index
    %26 = vector.load %arg2[%c0_34, %c0_35] : memref<8x56xf32, #tpu.memory_space<vmem>>, vector<8x56xf32>
    %c0_36 = arith.constant 0 : index
    %c0_37 = arith.constant 0 : index
    %27 = vector.load %arg3[%c0_36, %c0_37] : memref<8x1xf32, #tpu.memory_space<vmem>>, vector<8x1xf32>
    %c0_38 = arith.constant 0 : index
    %c0_39 = arith.constant 0 : index
    %c0_40 = arith.constant 0 : index
    %28 = vector.load %arg5[%c0_38, %c0_39, %c0_40] : memref<1x56x128xf32, #tpu.memory_space<vmem>>, vector<1x56x128xf32>
    %29 = vector.shape_cast %28 : vector<1x56x128xf32> to vector<56x128xf32>
    %cst_41 = arith.constant dense<0.000000e+00> : vector<8x128xf32>
    %30 = tpu.matmul %26, %29, %cst_41 {dimension_numbers = #tpu.dot_dimension_numbers<[1], [0], [0], [1], [0, 0, 1, 1], [], []>} : vector<8x56xf32>, vector<56x128xf32>, vector<8x128xf32> -> vector<8x128xf32>
    %31 = vector.broadcast %27 : vector<8x1xf32> to vector<8x128xf32>
    %32 = arith.addf %30, %31 : vector<8x128xf32>
    %cst_42 = arith.constant 0.000000e+00 : f32
    %33 = vector.broadcast %cst_42 : f32 to vector<8x128xf32>
    %34 = arith.maximumf %32, %33 : vector<8x128xf32>
    %c0_43 = arith.constant 0 : index
    %c0_44 = arith.constant 0 : index
    %c0_45 = arith.constant 0 : index
    %35 = vector.load %arg4[%c0_43, %c0_44, %c0_45] : memref<1x8x128xf32, #tpu.memory_space<vmem>>, vector<1x8x128xf32>
    %36 = vector.shape_cast %35 : vector<1x8x128xf32> to vector<8x128xf32>
    %37 = vector.shape_cast %34 : vector<8x128xf32> to vector<1x8x128xf32>
    tpu.vector_store %arg4[%c0_43, %c0_44, %c0_45], %37 {strides = array<i32>} : memref<1x8x128xf32, #tpu.memory_space<vmem>>, vector<1x8x128xf32>,
    return
  }
  func.func @transform_0(%arg0: i32) -> (i32, i32, i32) {
    %c0_i32 = arith.constant 0 : i32
    %c0_i32_0 = arith.constant 0 : i32
    %c0_i32_1 = arith.constant 0 : i32
    return %arg0, %c0_i32, %c0_i32_0 : i32, i32, i32
  }
  func.func @transform_1(%arg0: i32) -> (i32, i32) {
    %c0_i32 = arith.constant 0 : i32
    %c0_i32_0 = arith.constant 0 : i32
    %c0_i32_1 = arith.constant 0 : i32
    return %c0_i32, %c0_i32_0 : i32, i32
  }
  func.func @transform_2(%arg0: i32) -> (i32, i32) {
    %c0_i32 = arith.constant 0 : i32
    %c0_i32_0 = arith.constant 0 : i32
    %c0_i32_1 = arith.constant 0 : i32
    return %c0_i32, %c0_i32_0 : i32, i32
  }
  func.func @transform_3(%arg0: i32) -> (i32, i32, i32) {
    %c0_i32 = arith.constant 0 : i32
    %c0_i32_0 = arith.constant 0 : i32
    %c0_i32_1 = arith.constant 0 : i32
    return %arg0, %c0_i32, %c0_i32_0 : i32, i32, i32
  }
}

</mosaic_0001>

<bundles_post_ra>
// kernel: tpu_custom_call.1
= control target key start
LH: loop header
LB: loop body
LE: loop exit
PB: predicated region body
PF: predicated region fallthrough
CT: control target
= control target key end

     0   :  { %8 = vsyncpa [#allocation4], 0  ;;  %s818_s0 = inlined_call_operand.hbm [shape: f32[2,8,128], index: 0, kind: input, shape index: {}]   ;;  %s819_s1 = inlined_call_operand.vmem [shape: f32[8,56], index: 1, kind: input, shape index: {}]   ;;  %s820_s2 = inlined_call_operand.vmem [shape: f32[8,1], index: 2, kind: input, shape index: {}]   ;;  %s821_s3 = inlined_call_operand.hbm [shape: f32[2,8,128], index: 3, kind: output, shape index: {}]  }
   0x1   :  { %10 = vsyncpa [#allocation4 + $0x1], 0 }
   0x2   :  { %11 = vsyncpa [#allocation5], 0 }
   0x3   :  { %13 = vsyncpa [#allocation5 + $0x1], 0  ;;  %s639_s12 = smov 0   ;;  %s641_s13 = smov 0  }
   0x4   :  { %s643_s14 = smov 0   ;;  %s645_s15 = smov 0  }
   0x5 LB: > { %s660_s16 = sadd.s32 4294967295, %s605_s15   ;;  %s405_s17 = sadd.s32 4294967294, %s605_s15   ;;  %s605_s15 = sphi %s645_s15, %s836_s15   ;;  %s601_s14 = sphi %s643_s14, %s835_s14   ;;  %s597_s13 = sphi %s641_s13, %s834_s13   ;;  %s593_s12 = sphi %s639_s12, %s833_s12  }
   0x6   : > { %s664_s18 = sadd.s32 1, %s605_s15   ;;  %s26_s19 = sadd.s32 1, %s601_s14 }
   0x7   : > { %s23_s20 = ssub.s32 %s605_s15, %s664_s18  ;;  %p33_p0 = scmp.ne.s32.totalorder %s601_s14, %s597_s13 }
   0x8   : > { %p24_p1 = scmp.eq.s32.totalorder %s23_s20, 0  ;;  %p34_p2 = scmp.eq.s32.totalorder %s605_s15, 0 }
   0x9   : > { %p39_p3 = scmp.ne.s32.totalorder %s597_s13, %s593_s12  ;;  %p40_p4 = scmp.eq.s32.totalorder %s660_s16, 0 }
   0xa   : > { %s676_s21 = scalar_select %p24_p1, %s601_s14, %s26_s19  }
   0xb   : > { %p678_p5 = por %p34_p2, %p33_p0  ;;  %p682_p6 = por %p40_p4, %p39_p3 }
   0xc   : > { %p105_p7 = scmp.eq.s32.totalorder %s660_s16, 1  ;;  %p111_p8 = scmp.eq.s32.totalorder %s405_s17, 1 }
   0xd   : > { %p464_p10 = scmp.lt.s32.totalorder %s605_s15, 2  ;;  %s137_s26 = sand.u32 1, %s601_s14  }
   0xe   : > { %p689_p11 = por %p105_p7, %p33_p0  ;;  %p693_p12 = por %p111_p8, %p39_p3 }
   0xf   : > { %s409_s27 = sshll.u32 %s605_s15, 7  ;;  %s408_s28 = sshll.u32 %s137_s26, 3 }
  0x10   : > { %s825_s24 = scalar_select %p689_p11, 1, 0 }
  0x11   : > { %s826_s25 = scalar_select %p693_p12, 1, 0 }
  0x12   : > { %s702_s4 = scalar_lea.hbm %s818_s0, %s409_s27  ;;  %s141_s5 = scalar_lea.vmem [#allocation3], %s408_s28 }
  0x13   : > { %s148_s6 = sshll.u32 %s141_s5, 4  ;;  %p706_p13 = pnand %p464_p10, %p678_p5  ;;  %s710_s6 = int_to_ptr.vmem [resolvable:$true] %s148_s6 }
  0x14   : > { %s138_s8 = scalar_lea.sflag [#allocation4], %s137_s26  ;;  %s509_s9 = scalar_lea.hbm %s702_s4, 128 }
  0x15   : > { %p510_p2 = scmp.ne.s32.totalorder %s702_s4, %s509_s9  ;;  %p511_p3 = pneg %p706_p13 }
  0x16   : > { %s514_s17 = scalar_lea.hbm %s818_s0, 256  ;;  %p515_p5 = scmp.lt.u32.totalorder %s702_s4, %s818_s0 }
  0x17   : > { %p512_p4 = pnand %p511_p3, %p510_p2  ;;  %p516_p8 = scmp.lt.u32.totalorder %s514_s17, %s509_s9 }
  0x18   : > { %p518_p9 = scmp.lt.u32.totalorder %s509_s9, %s702_s4 }
  0x19   : > { %p513_p7 = pneg %p512_p4  ;;  %p517_p10 = por %p516_p8, %p515_p5 }
  0x1b   : > { %p519_p0 = por %p518_p9, %p517_p10 }
  0x1d   : > { %p520_p1 = pnand %p519_p0, %p513_p7 }
  0x1f   : > { %523 = shalt.err (!%p520_p1)
}
  0x20   : > { %s524_s22 = scalar_lea.vmem %s710_s6, 128  ;;  %s607_s26 = smov [#allocation3]  }
  0x21   : > { %p525_p2 = scmp.ne.s32.totalorder %s710_s6, %s524_s22  ;;  %s529_s27 = sshll.u32 %s607_s26, 4  ;;  %s530_s27 = int_to_ptr.vmem [resolvable:$false] %s529_s27 }
  0x22   : > { %s531_s28 = scalar_lea.vmem %s530_s27, 256  ;;  %p532_p11 = scmp.lt.s32.totalorder %s710_s6, %s530_s27 }
  0x23   : > { %p527_p4 = pnand %p525_p2, %p511_p3  ;;  %p533_p5 = scmp.lt.s32.totalorder %s531_s28, %s524_s22 }
  0x25   : > { %p528_p12 = pneg %p527_p4  ;;  %p534_p8 = por %p533_p5, %p532_p11 }
  0x27   : > { %p535_p9 = pnand %p534_p8, %p528_p12 }
  0x29   : > { %538 = shalt.err (!%p535_p9)
}
  0x2a   : > { %459 = dma.hbm_to_vmem [thread:$0]  (!%p706_p13), %s702_s4, 128, %s710_s6, %s138_s8  }
  0x2b   : > { %p828_p0 = scmp.lt.s32.totalorder %s605_s15, 3  ;;  %p829_p1 = scmp.ge.s32.totalorder %s605_s15, 1 }
  0x2d   : > { %p154_p3 = pnand %p829_p1, %p828_p0 }
  0x2e   : > { %s744_s29 = sand.u32 (!%p154_p3), 1, %s597_s13  }
  0x2f   : > { %157 = sbr.rel (%p154_p3) target bundleno = 429 (0x1ad), region = 32  ;;  %s411_s30 = sshll.u32 (!%p154_p3), %s744_s29, 3 }
  0x30   : > { %s160_s5 = scalar_lea.sflag (!%p154_p3), [#allocation4], %s744_s29  ;;  %s163_s7 = scalar_lea.vmem (!%p154_p3), [#allocation3], %s411_s30 }
  0x36   : > { %584 = dma.done.wait (%p682_p6), %s160_s5, 128  }
  0x37   : > { %586 = vsyncadd (%p682_p6), %s160_s5, 4294967168  ;;  %vm187_vm0 = vcmask 23552   ;;  %v608_v0 = vmov 0.0   ;;  %vm195_vm1 = vcmask 15360   ;;  %vm202_vm2 = vcmask 7168   ;;  %v186_v2 = vld [vmem:[%s163_s7] sm:$0xff] }
  0x38   : > { %188 = vst.msk [vmem:[#allocation2] sm:$0xff] %vm187_vm0, %v608_v0  ;;  %v609_v1 = vmov 0.0|0.0   ;;  %s610_s4 = smov 3   ;;  %s611_s6 = smov 1   ;;  %vm616_vm3 = vmmov 0   ;;  %v232_v3 = vld [vmem:[%s820_s2] sm:$0xff] }
  0x39   : > { %196 = vst.msk [vmem:[#allocation2 + $0x8] sm:$0xff] %vm195_vm1, %v608_v0  ;;  %443 = vmatprep.subr.bf16.mxu0 %v609_v1  ;;  %190 = vrot.lane.b32.xlu0 %v186_v2, %s610_s4  ;;  %s612_s8 = smov 2   ;;  %s613_s23 = smov 127   ;;  %v617_v4 = vmov 0   ;;  %vm193_vm4 = vcmask 1047576   ;;  %vm207_vm5 = vcmask 1047560  }
  0x3a   : > { %203 = vst.msk [vmem:[#allocation2 + $0x10] sm:$0xff] %vm202_vm2, %v608_v0  ;;  %204 = vrot.lane.b32.xlu1 %v186_v2, %s611_s6  ;;  %s614_s9 = smov 126   ;;  %s615_s10 = smov 125   ;;  %440 = vmatprep.mubr.msk.f32.mxu0 %vm616_vm3, %v608_v0  ;;  %vm200_vm6 = vcmask 1047568   ;;  %vm213_vm7 = vcmask 1039360   ;;  %vm215_vm8 = vcmask 1048568  }
  0x3b   : > { %508 = vset.pattern.permute.xlu0 %v617_v4  ;;  %vm220_vm9 = vcmask 1031168   ;;  %vm227_vm10 = vcmask 1022976   ;;  %vm222_vm11 = vcmask 1048560   ;;  %vm229_vm12 = vcmask 1048552   ;;  %v231_v20 = vld [vmem:[%s819_s1] sm:$0xff]  ;;  %s415_s22 = sshll.u32 %s660_s16, 7 }
  0x3c   : > { %vm245_vm13 = vcmask 457728   ;;  %s185_s26 = scalar_lea.vmem [#allocation6], %s411_s30  ;;  %s774_s7 = scalar_lea.hbm %s821_s3, %s415_s22 }
  0x3d   : > { %197 = vrot.lane.b32.xlu0 %v186_v2, %s612_s8  ;;  %s335_s27 = sshll.u32 %s185_s26, 4  ;;  %s322_s4 = scalar_lea.sflag [#allocation5], %s744_s29  ;;  %s776_s27 = int_to_ptr.vmem [resolvable:$true] %s335_s27 }
  0x3e   : > { %210 = vrot.lane.b32.xlu1 %v186_v2, %s613_s23  ;;  %s539_s6 = scalar_lea.vmem %s776_s27, 128  ;;  %p830_p11 = scmp.ne.s32.totalorder %s825_s24, 0 }
  0x3f   : > { %p540_p6 = scmp.ne.s32.totalorder %s776_s27, %s539_s6  ;;  %s618_s16 = smov [#allocation6]  }
  0x40   : > { %s543_s30 = sshll.u32 %s618_s16, 4  ;;  %s544_s30 = int_to_ptr.vmem [resolvable:$false] %s543_s30 }
  0x41   : > { %217 = vrot.lane.b32.xlu0 %v186_v2, %s614_s9  ;;  %p541_p12 = pnand %p540_p6, %p830_p11  ;;  %s545_s8 = scalar_lea.vmem %s544_s30, 256 }
  0x42   : > { %224 = vrot.lane.b32.xlu1 %v186_v2, %s615_s10  ;;  %p546_p7 = scmp.lt.s32.totalorder %s776_s27, %s544_s30  ;;  %p547_p10 = scmp.lt.s32.totalorder %s545_s8, %s539_s6 }
  0x43   : > { %p542_p13 = pneg %p541_p12 }
  0x44   : > { %p548_p2 = por %p547_p10, %p546_p7 }
  0x45   : > { %242 = vperm.xlu0 %508, %v232_v3  }
  0x46   : > { %p549_p4 = pnand %p548_p2, %p542_p13 }
  0xab   : > { %v191_v5 = vpop.permute.xlu0 %190 }
  0xac   : > { %v205_v6 = vpop.permute.xlu1 %204  ;;  %194 = vst.msk [vmem:[#allocation2] sm:$0xff] %vm193_vm4, %v191_v5 }
  0xad   : > { %208 = vst.msk [vmem:[#allocation2 + $0x10] sm:$0xff] %vm207_vm5, %v205_v6 }
  0xaf   : > { %v198_v7 = vpop.permute.xlu0 %197 }
  0xb0   : > { %v211_v8 = vpop.permute.xlu1 %210  ;;  %201 = vst.msk [vmem:[#allocation2 + $0x8] sm:$0xff] %vm200_vm6, %v198_v7 }
  0xb1   : > { %214 = vst.msk [vmem:[#allocation2 + $0x20] sm:$0xff] %vm213_vm7, %v211_v8 }
  0xb2   : > { %216 = vst.msk [vmem:[#allocation2 + $0x20] sm:$0xff] %vm215_vm8, %v608_v0 }
  0xb3   : > { %v218_v9 = vpop.permute.xlu0 %217  ;;  %v233_v11 = vld [vmem:[#allocation2] sm:$0xff] }
  0xb4   : > { %v225_v10 = vpop.permute.xlu1 %224  ;;  %221 = vst.msk [vmem:[#allocation2 + $0x28] sm:$0xff] %vm220_vm9, %v218_v9  ;;  %v235_v13 = vld [vmem:[#allocation2 + $0x10] sm:$0xff] }
  0xb5   : > { %228 = vst.msk [vmem:[#allocation2 + $0x30] sm:$0xff] %vm227_vm10, %v225_v10  ;;  %v447_v15 = vpack.c.bf16 %v186_v2, %v235_v13 }
  0xb6   : > { %223 = vst.msk [vmem:[#allocation2 + $0x28] sm:$0xff] %vm222_vm11, %v608_v0 }
  0xb7   : > { %230 = vst.msk [vmem:[#allocation2 + $0x30] sm:$0xff] %vm229_vm12, %v608_v0  ;;  %v234_v12 = vld [vmem:[#allocation2 + $0x8] sm:$0xff] }
  0xb8   : > { %v444_v14 = vpack.c.bf16 %v234_v12, %v233_v11 }
  0xb9   : > { %v237_v16 = vld [vmem:[#allocation2 + $0x20] sm:$0xff] }
  0xba   : > { %445 = vmatpush3.bf16.msra.mxu0 %v444_v14 }
  0xbb   : > { %446 = vmatprep.subr.bf16.mxu0 %v609_v1 }
  0xbd   : > { %v238_v17 = vld [vmem:[#allocation2 + $0x28] sm:$0xff] }
  0xbe   : > { %448 = vmatpush3.bf16.msra.mxu0 %v447_v15  ;;  %v450_v18 = vpack.c.bf16 %v238_v17, %v237_v16  ;;  %v239_v19 = vld [vmem:[#allocation2 + $0x30] sm:$0xff] }
  0xbf   : > { %449 = vmatprep.subr.bf16.mxu0 %v609_v1 }
  0xc2   : > { %451 = vmatpush3.bf16.msra.mxu0 %v450_v18 }
  0xc3   : > { %438 = vmatprep.subr.mxu0 %v608_v0 }
  0xc4   : > { %v243_v21 = vpop.permute.xlu0 %242 }
  0xc6   : > { %439 = vmatpush3.msra.mxu0 %v239_v19 }
  0xc7   : > { %441 = vmatmul.mubr.msk.f32.vlgmr.msra.gmra.mrb[0].mxu0 %vm245_vm13, %v231_v20 }
 0x19a   : > { %v315_v22 = vpop.f32.mrb[0].mxu0 }
 0x19b   : > { %v316_v23 = vadd.f32 %v315_v22, %v243_v21  ;;  %v442_v24 = vpop.f32.mrb[1].mxu0 }
 0x19d   : > { %v319_v25 = vmax.f32 %v316_v23, 0.0 }
 0x19f   : > { %320 = vst [vmem:[%s185_s26] sm:$0xff] %v319_v25 }
 0x1a0   : > { %552 = shalt.err (!%p549_p4)
}
 0x1a1   : > { %s553_s29 = scalar_lea.hbm %s774_s7, 128  ;;  %s557_s10 = scalar_lea.hbm %s821_s3, 256 }
 0x1a2   : > { %p554_p5 = scmp.ne.s32.totalorder %s774_s7, %s553_s29  ;;  %p558_p0 = scmp.lt.u32.totalorder %s774_s7, %s821_s3 }
 0x1a3   : > { %p559_p1 = scmp.lt.u32.totalorder %s557_s10, %s553_s29  ;;  %p561_p6 = scmp.lt.u32.totalorder %s553_s29, %s774_s7 }
 0x1a4   : > { %p555_p8 = pnand %p554_p5, %p830_p11 }
 0x1a5   : > { %p560_p3 = por %p559_p1, %p558_p0 }
 0x1a6   : > { %p556_p9 = pneg %p555_p8 }
 0x1a7   : > { %p562_p12 = por %p561_p6, %p560_p3 }
 0x1a9   : > { %p563_p13 = pnand %p562_p12, %p556_p9 }
 0x1ab   : > { %566 = shalt.err (!%p563_p13)
}
 0x1ac   : > { %454 = dma.vmem_to_hbm [thread:$0]  (%p830_p11), %s776_s27, 128, %s774_s7, %s322_s4  }
 0x1ad PF: > { %s347_s19 = sand.u32 1, %s593_s12   ;;  %p831_p7 = scmp.ne.s32.totalorder %s826_s25, 0 }
 0x1ae   : > { %p832_p10 = scmp.ge.s32.totalorder %s605_s15, 2  ;;  %s348_s20 = scalar_lea.sflag [#allocation5], %s347_s19 }
 0x1b0   : > { %p461_p2 = pnand %p832_p10, %p831_p7 }
 0x1b2   : > { %588 = dma.done.wait (!%p461_p2), %s348_s20, 128  }
 0x1b3   : > { %590 = vsyncadd (!%p461_p2), %s348_s20, 4294967168  ;;  %p16_p4 = scmp.ge.s32.totalorder %s664_s18, 4   ;;  %s833_s12 = smov %s597_s13 }
 0x1b4   : > { %s834_s13 = smov %s601_s14  ;;  %s835_s14 = smov %s676_s21 }
 0x1b5   : > { %s836_s15 = smov %s664_s18  ;;  %18 = sbr.rel (!%p16_p4) target bundleno = 5 (0x5), region = 77 }
 0x1bc   :  { %353 = vsyncpa [#allocation4], 1 }
 0x1bd   :  { %355 = vsyncpa [#allocation4 + $0x1], 1 }
 0x1be   :  { %356 = vsyncpa [#allocation5], 1 }
 0x1bf   :  { %358 = vsyncpa [#allocation5 + $0x1], 1 }

</bundles_post_ra>
